<compile_context>
chip_gen: v5e
topology: v5e:2x2
jax: 0.10.0
libtpu: 0.0.40
codegen_flags: <defaults>
</compile_context>

<pallas_src>
import jax
import jax.numpy as jnp
from jax import lax
from jax.experimental import pallas as pl
from jax.experimental.pallas import tpu as pltpu


EPS = 1e-3   # nn.BatchNorm1d(..., eps=0.001) in the reference module


# --------------------------------------------------------------------------- #
# Kernel
# --------------------------------------------------------------------------- #
def mixing_kernel(x_ref,
                  scale_t_ref, shift_t_ref,   # temporal BN folded, (L, N) f32
                  wt_ref, bt_ref,             # temporal Linear: (L, L)[out,in] bf16, (L, 1) f32
                  scale_f_ref, shift_f_ref,   # feature BN folded, (L, N) f32
                  w1_ref, b1_ref,             # feature Linear 1: (N, FF) bf16, (1, FF) f32
                  w2_ref, b2_ref,             # feature Linear 2: (FF, N) bf16, (1, N) f32
                  o_ref):
    TB, L, N = x_ref.shape

    x = x_ref[...].astype(jnp.float32)                        # (TB, L, N)

    # ---------------- Temporal mixing (kept in (L, N) layout, no transposes) ----
    xt = x * scale_t_ref[...] + shift_t_ref[...]              # BN, (L,N) broadcast over TB
    # y[b, l, n] = sum_k wt[l, k] * xt[b, k, n]   -> batched MXU matmul, bf16 in / f32 acc
    wt_b = jnp.broadcast_to(wt_ref[...], (TB, L, L))
    yt = lax.dot_general(
        wt_b, xt.astype(jnp.bfloat16),
        dimension_numbers=(((2,), (1,)), ((0,), (0,))),
        preferred_element_type=jnp.float32)                   # (TB, L, N)
    yt = jnp.maximum(yt + bt_ref[...], 0.0)                   # bias over L, ReLU (f32)
    h = x + yt                                                # temporal residual

    # ---------------- Feature mixing on a flattened (TB*L, N) slab ----------------
    hn = h * scale_f_ref[...] + shift_f_ref[...]              # BN, (L,N) broadcast over TB
    # Layout-preserving reshape when L % 8 == 0 (sublane tile); correct regardless.
    hn2 = hn.reshape(TB * L, N).astype(jnp.bfloat16)
    z1 = jnp.dot(hn2, w1_ref[...],
                 preferred_element_type=jnp.float32) + b1_ref[...]
    z1 = jnp.maximum(z1, 0.0)                                 # (TB*L, FF) f32
    z2 = jnp.dot(z1.astype(jnp.bfloat16), w2_ref[...],
                 preferred_element_type=jnp.float32) + b2_ref[...]
    o_ref[...] = (z2.reshape(TB, L, N) + h).astype(o_ref.dtype)


# --------------------------------------------------------------------------- #
# Wrapper
# --------------------------------------------------------------------------- #
def _prepare_params(p, compute_dtype=jnp.bfloat16):
    """Fold BN into scale/shift, re-layout temporal BN to (L, N), pre-transpose and
    pre-cast weights.  One-time XLA work outside the kernel (hoisted from the grid)."""
    scale_t = p["g_t"] * lax.rsqrt(p["v_t"] + EPS)            # (N, L)
    shift_t = p["b_t"] - p["m_t"] * scale_t                   # (N, L)
    scale_f = p["g_f"] * lax.rsqrt(p["v_f"] + EPS)            # (L, N)
    shift_f = p["b_f"] - p["m_f"] * scale_f                   # (L, N)
    return dict(
        scale_t=scale_t.T, shift_t=shift_t.T,                 # -> (L, N)
        wt=p["wt"].astype(compute_dtype),                     # (L, L) [out, in]
        bt=p["bt"].reshape(-1, 1),                            # (L, 1)
        scale_f=scale_f, shift_f=shift_f,                     # (L, N)
        w1=p["w1"].T.astype(compute_dtype),                   # (N, FF)
        b1=p["b1"],                                           # (1, FF)
        w2=p["w2"].T.astype(compute_dtype),                   # (FF, N)
        b2=p["b2"],                                           # (1, N)
    )


def _pick_block_b(B, L, N, ff):
    """Batch tile so the flattened feature-mix M dim (TB*L) is >= 256 (v6e/v7x MXU,
    also a multiple of 128 for v5e), capped by B and a small working-set budget so
    blocks stay well inside VMEM on every generation (incl. v7x's 64 MiB)."""
    tb = pl.cdiv(256, L)
    bytes_per_batch_elem = 4 * L * (4 * N + ff)               # x, h, hn, out + z1 (f32)
    tb = min(tb, max(1, (4 << 20) // max(bytes_per_batch_elem, 1)))
    return max(1, min(tb, B))


def mixing_layer(x, params, *, block_b=None, compute_dtype=jnp.bfloat16):
    """x: (B, L, N) float32.  Returns (B, L, N).  Eval-mode MixingLayer forward."""
    B, L, N = x.shape
    kp = _prepare_params(params, compute_dtype)
    FF = kp["w1"].shape[1]

    TB = block_b if block_b is not None else _pick_block_b(B, L, N, FF)
    grid_b = pl.cdiv(B, TB)
    B_pad = grid_b * TB
    if B_pad != B:
        x = jnp.pad(x, ((0, B_pad - B), (0, 0), (0, 0)))      # padded rows sliced off below

    def full(arr):  # grid-invariant parameter block (whole array resident in VMEM)
        return pl.BlockSpec(arr.shape, lambda b: (0,) * arr.ndim)

    in_specs = [
        pl.BlockSpec((TB, L, N), lambda b: (b, 0, 0)),        # x
        full(kp["scale_t"]), full(kp["shift_t"]),
        full(kp["wt"]), full(kp["bt"]),
        full(kp["scale_f"]), full(kp["shift_f"]),
        full(kp["w1"]), full(kp["b1"]),
        full(kp["w2"]), full(kp["b2"]),
    ]

    out = pl.pallas_call(
        mixing_kernel,
        out_shape=jax.ShapeDtypeStruct((B_pad, L, N), x.dtype),
        grid_spec=pltpu.PrefetchScalarGridSpec(
            num_scalar_prefetch=0,
            grid=(grid_b,),
            in_specs=in_specs,
            out_specs=pl.BlockSpec((TB, L, N), lambda b: (b, 0, 0)),
        ),
        compiler_params=pltpu.CompilerParams(
            dimension_semantics=("parallel",),                # shards batch grid on v7x's 2 TCs
            vmem_limit_bytes=32 * 1024 * 1024,
        ),
    )(x, kp["scale_t"], kp["shift_t"], kp["wt"], kp["bt"],
      kp["scale_f"], kp["shift_f"], kp["w1"], kp["b1"], kp["w2"], kp["b2"])

    return out[:B] if B_pad != B else out


# --------------------------------------------------------------------------- #
# Parameter init + pure-JAX reference (eval-mode PyTorch semantics)
# --------------------------------------------------------------------------- #
def init_params(key, n_series, input_size, ff_dim):
    """Deterministic parameter init mimicking the PyTorch module's shapes."""
    L, N, ff = input_size, n_series, ff_dim
    ks = jax.random.split(key, 16)
    u = lambda k, shape, scale: jax.random.uniform(k, shape, jnp.float32, -scale, scale)

    # temporal BatchNorm1d(N*L): flatten order (after permute) is n*L + l -> reshape (N, L)
    g_t = 1.0 + 0.1 * jax.random.normal(ks[0], (N, L), jnp.float32)
    b_t = 0.1 * jax.random.normal(ks[1], (N, L), jnp.float32)
    m_t = 0.1 * jax.random.normal(ks[2], (N, L), jnp.float32)
    v_t = jax.random.uniform(ks[3], (N, L), jnp.float32, 0.5, 1.5)
    # temporal Linear(L, L)
    wt = u(ks[4], (L, L), 1.0 / jnp.sqrt(L))
    bt = u(ks[5], (1, L), 1.0 / jnp.sqrt(L))
    # feature BatchNorm1d(N*L): flatten order is l*N + n -> reshape (L, N)
    g_f = 1.0 + 0.1 * jax.random.normal(ks[6], (L, N), jnp.float32)
    b_f = 0.1 * jax.random.normal(ks[7], (L, N), jnp.float32)
    m_f = 0.1 * jax.random.normal(ks[8], (L, N), jnp.float32)
    v_f = jax.random.uniform(ks[9], (L, N), jnp.float32, 0.5, 1.5)
    # feature Linear(N, ff) and Linear(ff, N)
    w1 = u(ks[10], (ff, N), 1.0 / jnp.sqrt(N))
    b1 = u(ks[11], (1, ff), 1.0 / jnp.sqrt(N))
    w2 = u(ks[12], (N, ff), 1.0 / jnp.sqrt(ff))
    b2 = u(ks[13], (1, N), 1.0 / jnp.sqrt(ff))

    return dict(g_t=g_t, b_t=b_t, m_t=m_t, v_t=v_t, wt=wt, bt=bt,
                g_f=g_f, b_f=b_f, m_f=m_f, v_f=v_f,
                w1=w1, b1=b1, w2=w2, b2=b2)


def mixing_layer_ref(x, p, compute_dtype=jnp.bfloat16):
    """Pure-JAX reference with eval-mode PyTorch semantics.  Matmul operands are cast
    to `compute_dtype` with f32 accumulation, mirroring the kernel's MXU precision."""
    c = lambda a: a.astype(compute_dtype)
    # temporal mixing
    xt = jnp.transpose(x, (0, 2, 1))                                     # (B, N, L)
    xt = (xt - p["m_t"]) * lax.rsqrt(p["v_t"] + EPS) * p["g_t"] + p["b_t"]
    yt = jnp.einsum("bnl,kl->bnk", c(xt), c(p["wt"]),
                    preferred_element_type=jnp.float32) + p["bt"]
    yt = jax.nn.relu(yt)
    h = x + jnp.transpose(yt, (0, 2, 1))
    # feature mixing
    hn = (h - p["m_f"]) * lax.rsqrt(p["v_f"] + EPS) * p["g_f"] + p["b_f"]
    z1 = jax.nn.relu(jnp.einsum("bln,fn->blf", c(hn), c(p["w1"]),
                                preferred_element_type=jnp.float32) + p["b1"])
    z2 = jnp.einsum("blf,nf->bln", c(z1), c(p["w2"]),
                    preferred_element_type=jnp.float32) + p["b2"]
    return z2 + h


if __name__ == "__main__":
    B, L, N, FF = 2, 8, 4, 32   # batch, input_size, n_series, ff_dim

    key = jax.random.PRNGKey(0)
    k_x, k_p = jax.random.split(key)
    x = jax.random.normal(k_x, (B, L, N), jnp.float32)
    params = init_params(k_p, n_series=N, input_size=L, ff_dim=FF)

    out = jax.block_until_ready(mixing_layer(x, params))
    ref = jax.block_until_ready(mixing_layer_ref(x, params))

    assert out.shape == (B, L, N)
    # Tolerance covers bf16 operand rounding differences vs. the matched reference.
    assert jnp.allclose(out, ref, atol=1e-2, rtol=1e-2), "mismatch vs reference"
    print("KERNEL_OK")
</pallas_src>

<mosaic_0001>
module attributes {stable_mosaic.version = 11 : i64} {
  func.func @mixing_kernel(%arg0: i32, %arg1: memref<2x8x4xf32, #tpu.memory_space<vmem>>, %arg2: memref<8x4xf32, #tpu.memory_space<vmem>>, %arg3: memref<8x4xf32, #tpu.memory_space<vmem>>, %arg4: memref<8x8xbf16, #tpu.memory_space<vmem>>, %arg5: memref<8x1xf32, #tpu.memory_space<vmem>>, %arg6: memref<8x4xf32, #tpu.memory_space<vmem>>, %arg7: memref<8x4xf32, #tpu.memory_space<vmem>>, %arg8: memref<4x32xbf16, #tpu.memory_space<vmem>>, %arg9: memref<1x32xf32, #tpu.memory_space<vmem>>, %arg10: memref<32x4xbf16, #tpu.memory_space<vmem>>, %arg11: memref<1x4xf32, #tpu.memory_space<vmem>>, %arg12: memref<2x8x4xf32, #tpu.memory_space<vmem>>) attributes {dimension_semantics = [#tpu.dimension_semantics<parallel>], iteration_bounds = array<i64: 1>, scalar_prefetch = 0 : i64, scratch_operands = 0 : i64, tpu.core_type = #tpu.core_type<tc>, window_params = [{transform_indices = @transform_0, window_bounds = array<i64: 2, 8, 4>}, {pipeline_mode = #tpu.pipeline_mode<synchronous>, transform_indices = @transform_1, window_bounds = array<i64: 8, 4>}, {pipeline_mode = #tpu.pipeline_mode<synchronous>, transform_indices = @transform_2, window_bounds = array<i64: 8, 4>}, {pipeline_mode = #tpu.pipeline_mode<synchronous>, transform_indices = @transform_3, window_bounds = array<i64: 8, 8>}, {pipeline_mode = #tpu.pipeline_mode<synchronous>, transform_indices = @transform_4, window_bounds = array<i64: 8, 1>}, {pipeline_mode = #tpu.pipeline_mode<synchronous>, transform_indices = @transform_5, window_bounds = array<i64: 8, 4>}, {pipeline_mode = #tpu.pipeline_mode<synchronous>, transform_indices = @transform_6, window_bounds = array<i64: 8, 4>}, {pipeline_mode = #tpu.pipeline_mode<synchronous>, transform_indices = @transform_7, window_bounds = array<i64: 4, 32>}, {pipeline_mode = #tpu.pipeline_mode<synchronous>, transform_indices = @transform_8, window_bounds = array<i64: 1, 32>}, {pipeline_mode = #tpu.pipeline_mode<synchronous>, transform_indices = @transform_9, window_bounds = array<i64: 32, 4>}, {pipeline_mode = #tpu.pipeline_mode<synchronous>, transform_indices = @transform_10, window_bounds = array<i64: 1, 4>}, {transform_indices = @transform_11, window_bounds = array<i64: 2, 8, 4>}]} {
    %c0 = arith.constant 0 : index
    %c0_0 = arith.constant 0 : index
    %c0_1 = arith.constant 0 : index
    %0 = vector.load %arg1[%c0, %c0_0, %c0_1] : memref<2x8x4xf32, #tpu.memory_space<vmem>>, vector<2x8x4xf32>
    %c0_2 = arith.constant 0 : index
    %c0_3 = arith.constant 0 : index
    %1 = vector.load %arg2[%c0_2, %c0_3] : memref<8x4xf32, #tpu.memory_space<vmem>>, vector<8x4xf32>
    %2 = vector.shape_cast %1 : vector<8x4xf32> to vector<1x8x4xf32>
    %3 = vector.broadcast %2 : vector<1x8x4xf32> to vector<2x8x4xf32>
    %4 = arith.mulf %0, %3 : vector<2x8x4xf32>
    %c0_4 = arith.constant 0 : index
    %c0_5 = arith.constant 0 : index
    %5 = vector.load %arg3[%c0_4, %c0_5] : memref<8x4xf32, #tpu.memory_space<vmem>>, vector<8x4xf32>
    %6 = vector.shape_cast %5 : vector<8x4xf32> to vector<1x8x4xf32>
    %7 = vector.broadcast %6 : vector<1x8x4xf32> to vector<2x8x4xf32>
    %8 = arith.addf %4, %7 : vector<2x8x4xf32>
    %c0_6 = arith.constant 0 : index
    %c0_7 = arith.constant 0 : index
    %9 = vector.load %arg4[%c0_6, %c0_7] : memref<8x8xbf16, #tpu.memory_space<vmem>>, vector<8x8xbf16>
    %10 = vector.shape_cast %9 : vector<8x8xbf16> to vector<1x8x8xbf16>
    %11 = vector.broadcast %10 : vector<1x8x8xbf16> to vector<2x8x8xbf16>
    %12 = arith.truncf %8 : vector<2x8x4xf32> to vector<2x8x4xbf16>
    %cst = arith.constant dense<0.000000e+00> : vector<2x8x4xf32>
    %13 = tpu.matmul %11, %12, %cst {dimension_numbers = #tpu.dot_dimension_numbers<[2], [1], [1], [2], [0, 0, 0, 1, 1, 2], [0], [0]>} : vector<2x8x8xbf16>, vector<2x8x4xbf16>, vector<2x8x4xf32> -> vector<2x8x4xf32>
    %c0_8 = arith.constant 0 : index
    %c0_9 = arith.constant 0 : index
    %14 = vector.load %arg5[%c0_8, %c0_9] : memref<8x1xf32, #tpu.memory_space<vmem>>, vector<8x1xf32>
    %15 = vector.shape_cast %14 : vector<8x1xf32> to vector<1x8x1xf32>
    %16 = vector.broadcast %15 : vector<1x8x1xf32> to vector<2x8x4xf32>
    %17 = arith.addf %13, %16 : vector<2x8x4xf32>
    %cst_10 = arith.constant 0.000000e+00 : f32
    %18 = vector.broadcast %cst_10 : f32 to vector<2x8x4xf32>
    %19 = arith.maximumf %17, %18 : vector<2x8x4xf32>
    %20 = arith.addf %0, %19 : vector<2x8x4xf32>
    %c0_11 = arith.constant 0 : index
    %c0_12 = arith.constant 0 : index
    %21 = vector.load %arg6[%c0_11, %c0_12] : memref<8x4xf32, #tpu.memory_space<vmem>>, vector<8x4xf32>
    %22 = vector.shape_cast %21 : vector<8x4xf32> to vector<1x8x4xf32>
    %23 = vector.broadcast %22 : vector<1x8x4xf32> to vector<2x8x4xf32>
    %24 = arith.mulf %20, %23 : vector<2x8x4xf32>
    %c0_13 = arith.constant 0 : index
    %c0_14 = arith.constant 0 : index
    %25 = vector.load %arg7[%c0_13, %c0_14] : memref<8x4xf32, #tpu.memory_space<vmem>>, vector<8x4xf32>
    %26 = vector.shape_cast %25 : vector<8x4xf32> to vector<1x8x4xf32>
    %27 = vector.broadcast %26 : vector<1x8x4xf32> to vector<2x8x4xf32>
    %28 = arith.addf %24, %27 : vector<2x8x4xf32>
    %29 = vector.shape_cast %28 : vector<2x8x4xf32> to vector<16x4xf32>
    %30 = arith.truncf %29 : vector<16x4xf32> to vector<16x4xbf16>
    %c0_15 = arith.constant 0 : index
    %c0_16 = arith.constant 0 : index
    %31 = vector.load %arg8[%c0_15, %c0_16] : memref<4x32xbf16, #tpu.memory_space<vmem>>, vector<4x32xbf16>
    %cst_17 = arith.constant dense<0.000000e+00> : vector<16x32xf32>
    %32 = tpu.matmul %30, %31, %cst_17 {dimension_numbers = #tpu.dot_dimension_numbers<[1], [0], [0], [1], [0, 0, 1, 1], [], []>} : vector<16x4xbf16>, vector<4x32xbf16>, vector<16x32xf32> -> vector<16x32xf32>
    %c0_18 = arith.constant 0 : index
    %c0_19 = arith.constant 0 : index
    %33 = vector.load %arg9[%c0_18, %c0_19] : memref<1x32xf32, #tpu.memory_space<vmem>>, vector<1x32xf32>
    %34 = vector.broadcast %33 : vector<1x32xf32> to vector<16x32xf32>
    %35 = arith.addf %32, %34 : vector<16x32xf32>
    %cst_20 = arith.constant 0.000000e+00 : f32
    %36 = vector.broadcast %cst_20 : f32 to vector<16x32xf32>
    %37 = arith.maximumf %35, %36 : vector<16x32xf32>
    %38 = arith.truncf %37 : vector<16x32xf32> to vector<16x32xbf16>
    %c0_21 = arith.constant 0 : index
    %c0_22 = arith.constant 0 : index
    %39 = vector.load %arg10[%c0_21, %c0_22] : memref<32x4xbf16, #tpu.memory_space<vmem>>, vector<32x4xbf16>
    %cst_23 = arith.constant dense<0.000000e+00> : vector<16x4xf32>
    %40 = tpu.matmul %38, %39, %cst_23 {dimension_numbers = #tpu.dot_dimension_numbers<[1], [0], [0], [1], [0, 0, 1, 1], [], []>} : vector<16x32xbf16>, vector<32x4xbf16>, vector<16x4xf32> -> vector<16x4xf32>
    %c0_24 = arith.constant 0 : index
    %c0_25 = arith.constant 0 : index
    %41 = vector.load %arg11[%c0_24, %c0_25] : memref<1x4xf32, #tpu.memory_space<vmem>>, vector<1x4xf32>
    %42 = vector.broadcast %41 : vector<1x4xf32> to vector<16x4xf32>
    %43 = arith.addf %40, %42 : vector<16x4xf32>
    %44 = vector.shape_cast %43 : vector<16x4xf32> to vector<2x8x4xf32>
    %45 = arith.addf %44, %20 : vector<2x8x4xf32>
    %c0_26 = arith.constant 0 : index
    %c0_27 = arith.constant 0 : index
    %c0_28 = arith.constant 0 : index
    %46 = vector.load %arg12[%c0_26, %c0_27, %c0_28] : memref<2x8x4xf32, #tpu.memory_space<vmem>>, vector<2x8x4xf32>
    tpu.vector_store %arg12[%c0_26, %c0_27, %c0_28], %45 {strides = array<i32>} : memref<2x8x4xf32, #tpu.memory_space<vmem>>, vector<2x8x4xf32>,
    return
  }
  func.func @transform_0(%arg0: i32) -> (i32, i32, i32) {
    %c0_i32 = arith.constant 0 : i32
    %c0_i32_0 = arith.constant 0 : i32
    %c0_i32_1 = arith.constant 0 : i32
    return %arg0, %c0_i32, %c0_i32_0 : i32, i32, i32
  }
  func.func @transform_1(%arg0: i32) -> (i32, i32) {
    %c0_i32 = arith.constant 0 : i32
    %c0_i32_0 = arith.constant 0 : i32
    %c0_i32_1 = arith.constant 0 : i32
    return %c0_i32, %c0_i32_0 : i32, i32
  }
  func.func @transform_2(%arg0: i32) -> (i32, i32) {
    %c0_i32 = arith.constant 0 : i32
    %c0_i32_0 = arith.constant 0 : i32
    %c0_i32_1 = arith.constant 0 : i32
    return %c0_i32, %c0_i32_0 : i32, i32
  }
  func.func @transform_3(%arg0: i32) -> (i32, i32) {
    %c0_i32 = arith.constant 0 : i32
    %c0_i32_0 = arith.constant 0 : i32
    %c0_i32_1 = arith.constant 0 : i32
    return %c0_i32, %c0_i32_0 : i32, i32
  }
  func.func @transform_4(%arg0: i32) -> (i32, i32) {
    %c0_i32 = arith.constant 0 : i32
    %c0_i32_0 = arith.constant 0 : i32
    %c0_i32_1 = arith.constant 0 : i32
    return %c0_i32, %c0_i32_0 : i32, i32
  }
  func.func @transform_5(%arg0: i32) -> (i32, i32) {
    %c0_i32 = arith.constant 0 : i32
    %c0_i32_0 = arith.constant 0 : i32
    %c0_i32_1 = arith.constant 0 : i32
    return %c0_i32, %c0_i32_0 : i32, i32
  }
  func.func @transform_6(%arg0: i32) -> (i32, i32) {
    %c0_i32 = arith.constant 0 : i32
    %c0_i32_0 = arith.constant 0 : i32
    %c0_i32_1 = arith.constant 0 : i32
    return %c0_i32, %c0_i32_0 : i32, i32
  }
  func.func @transform_7(%arg0: i32) -> (i32, i32) {
    %c0_i32 = arith.constant 0 : i32
    %c0_i32_0 = arith.constant 0 : i32
    %c0_i32_1 = arith.constant 0 : i32
    return %c0_i32, %c0_i32_0 : i32, i32
  }
  func.func @transform_8(%arg0: i32) -> (i32, i32) {
    %c0_i32 = arith.constant 0 : i32
    %c0_i32_0 = arith.constant 0 : i32
    %c0_i32_1 = arith.constant 0 : i32
    return %c0_i32, %c0_i32_0 : i32, i32
  }
  func.func @transform_9(%arg0: i32) -> (i32, i32) {
    %c0_i32 = arith.constant 0 : i32
    %c0_i32_0 = arith.constant 0 : i32
    %c0_i32_1 = arith.constant 0 : i32
    return %c0_i32, %c0_i32_0 : i32, i32
  }
  func.func @transform_10(%arg0: i32) -> (i32, i32) {
    %c0_i32 = arith.constant 0 : i32
    %c0_i32_0 = arith.constant 0 : i32
    %c0_i32_1 = arith.constant 0 : i32
    return %c0_i32, %c0_i32_0 : i32, i32
  }
  func.func @transform_11(%arg0: i32) -> (i32, i32, i32) {
    %c0_i32 = arith.constant 0 : i32
    %c0_i32_0 = arith.constant 0 : i32
    %c0_i32_1 = arith.constant 0 : i32
    return %arg0, %c0_i32, %c0_i32_0 : i32, i32, i32
  }
}

</mosaic_0001>

<bundles_post_ra>
// kernel: tpu_custom_call.1
= control target key start
LH: loop header
LB: loop body
LE: loop exit
PB: predicated region body
PF: predicated region fallthrough
CT: control target
= control target key end

     0   :  { %v198_v3 = vmov 0   ;;  %vm60_vm0 = vcmask 1043456   ;;  %vm56_vm1 = vcmask 64512   ;;  %vm113_vm2 = vcmask 1041408   ;;  %s307_s0 = inlined_call_operand.vmem [shape: f32[2,8,4], index: 0, kind: input, shape index: {}]   ;;  %s308_s1 = inlined_call_operand.vmem [shape: f32[8,4], index: 1, kind: input, shape index: {}]   ;;  %s309_s2 = inlined_call_operand.vmem [shape: f32[8,4], index: 2, kind: input, shape index: {}]   ;;  %s310_s4 = inlined_call_operand.vmem [shape: f32[8,1], index: 4, kind: input, shape index: {}]   ;;  %s311_s3 = inlined_call_operand.vmem [shape: bf16[8,8], index: 3, kind: input, shape index: {}]   ;;  %s312_s8 = inlined_call_operand.vmem [shape: f32[1,32], index: 8, kind: input, shape index: {}]   ;;  %s313_s7 = inlined_call_operand.vmem [shape: bf16[4,32], index: 7, kind: input, shape index: {}]   ;;  %s314_s5 = inlined_call_operand.vmem [shape: f32[8,4], index: 5, kind: input, shape index: {}]   ;;  %s315_s6 = inlined_call_operand.vmem [shape: f32[8,4], index: 6, kind: input, shape index: {}]   ;;  %s316_s10 = inlined_call_operand.vmem [shape: f32[1,4], index: 10, kind: input, shape index: {}]   ;;  %s317_s9 = inlined_call_operand.vmem [shape: bf16[32,4], index: 9, kind: input, shape index: {}]   ;;  %s318_s11 = inlined_call_operand.vmem [shape: f32[2,8,4], index: 11, kind: output, shape index: {}]  }
   0x1   :  { %v39_v0 = vld [vmem:[%s307_s0] sm:$0xff]  ;;  %195 = vset.pattern.permute.xlu0 %v198_v3  ;;  %v40_v5 = vld [vmem:[%s307_s0 + $0x8] sm:$0xff]  ;;  %vm109_vm3 = vcmask 31744   ;;  %vm154_vm4 = vcmask 261120  }
   0x2   :  { %v41_v1 = vld [vmem:[%s308_s1] sm:$0xff]  ;;  %v193_v35 = vld [vmem:[%s317_s9 + $0x8] sm:$0xff] }
   0x3   :  { %v44_v2 = vld [vmem:[%s309_s2] sm:$0xff]  ;;  %v42_v4 = vmul.f32 %v41_v1, %v39_v0  ;;  %v43_v7 = vmul.f32 %v41_v1, %v40_v5  ;;  %164 = vmatpush.bf16.msra.mxu3 %v193_v35 }
   0x4   :  { %v50_v6 = vld [vmem:[%s310_s4] sm:$0xff] }
   0x5   :  { %53 = vperm.xlu0 %195, %v50_v6   ;;  %v45_v8 = vadd.f32 %v44_v2, %v42_v4  ;;  %v46_v9 = vadd.f32 %v44_v2, %v43_v7  ;;  %v47_v14 = vld [vmem:[%s311_s3] sm:$0xf] }
   0x6   :  { %v104_v15 = vld [vmem:[%s313_s7] sm:$0x3] }
   0x7   :  { %v48_v10 = vpack.c.bf16 %v45_v8, %v45_v8  ;;  %v49_v11 = vpack.c.bf16 %v46_v9, %v46_v9  ;;  %v115_v16 = vsel %vm113_vm2, %v104_v15, 0  ;;  %v97_v23 = vld [vmem:[%s314_s5] sm:$0xff] }
   0x8   :  { %124 = vmatpush.bf16.msra.mxu2 %v115_v16  ;;  %v100_v27 = vld [vmem:[%s315_s6] sm:$0xff] }
   0x9   :  { %v62_v12 = vsel %vm60_vm0, %v48_v10, 0  ;;  %v78_v13 = vsel %vm60_vm0, %v49_v11, 0  ;;  %v192_v36 = vld [vmem:[%s317_s9] sm:$0xff] }
   0xa   :  { %71 = vmatpush.bf16.msra.mxu0 %v62_v12  ;;  %87 = vmatpush.bf16.msra.mxu1 %v78_v13  ;;  %v196_v38 = vld [vmem:[%s312_s8] ss:$0 sm:$0xff] }
   0xb   :  { %165 = vmatpush.bf16.msra.mxu3 %v192_v36  ;;  %v197_v45 = vld [vmem:[%s316_s10] ss:$0 sm:$0xff] }
   0xd   :  { %180 = vmatmul.msk.bf16.vlgmr.msra.gmra.mxu0 %vm56_vm1, %v47_v14  ;;  %181 = vmatmul.msk.bf16.vlgmr.msra.gmra.mxu1 %vm56_vm1, %v47_v14 }
  0x77   :  { %v54_v17 = vpop.permute.xlu0 %53 }
  0x8a   :  { %v73_v18 = vpop.f32.mrf.mxu0  ;;  %v89_v20 = vpop.f32.mrf.mxu1 }
  0x8b   :  { %v74_v19 = vadd.f32 %v73_v18, %v54_v17  ;;  %v90_v21 = vadd.f32 %v89_v20, %v54_v17 }
  0x8d   :  { %v93_v22 = vmax.f32 %v74_v19, 0.0  ;;  %v94_v24 = vmax.f32 %v90_v21, 0.0 }
  0x8f   :  { %v95_v25 = vadd.f32 %v93_v22, %v39_v0  ;;  %v96_v26 = vadd.f32 %v94_v24, %v40_v5 }
  0x91   :  { %v98_v28 = vmul.f32 %v97_v23, %v95_v25  ;;  %v99_v29 = vmul.f32 %v97_v23, %v96_v26 }
  0x92   :  { %v75_v30 = vpop.f32.mrf.mxu0  ;;  %v91_v31 = vpop.f32.mrf.mxu1 }
  0x93   :  { %v101_v32 = vadd.f32 %v100_v27, %v98_v28  ;;  %v102_v33 = vadd.f32 %v100_v27, %v99_v29 }
  0x95   :  { %v103_v34 = vpack.c.bf16 %v102_v33, %v101_v32 }
  0x97   :  { %182 = vmatmul.msk.bf16.vlgmr.msra.gmra.mxu2 %vm109_vm3, %v103_v34 }
 0x11a   :  { %v126_v37 = vpop.f32.mrf.mxu2 }
 0x11b   :  { %v127_v39 = vadd.f32 %v196_v38, %v126_v37 }
 0x11d   :  { %v131_v42 = vmax.f32 %v127_v39, 0.0 }
 0x122   :  { %v128_v40 = vpop.f32.mrf.mxu2 }
 0x123   :  { %v129_v41 = vadd.f32 %v196_v38, %v128_v40 }
 0x125   :  { %v132_v43 = vmax.f32 %v129_v41, 0.0 }
 0x127   :  { %v133_v44 = vpack.c.bf16 %v132_v43, %v131_v42 }
 0x129   :  { %191 = vmatmul.msk.bf16.vlgmr.msra.gmra.mxu3 %vm154_vm4, %v133_v44 }
 0x1ac   :  { %v167_v46 = vpop.f32.mrf.mxu3 }
 0x1ad   :  { %v168_v47 = vadd.f32 %v197_v45, %v167_v46 }
 0x1af   :  { %v172_v48 = vadd.f32 %v168_v47, %v95_v25 }
 0x1b1   :  { %174 = vst.msk [vmem:[%s318_s11] sm:$0xff] %vm109_vm3, %v172_v48 }
 0x1b4   :  { %v169_v49 = vpop.f32.mrf.mxu3 }
 0x1b5   :  { %v170_v50 = vadd.f32 %v197_v45, %v169_v49 }
 0x1b7   :  { %v173_v51 = vadd.f32 %v170_v50, %v96_v26 }
 0x1b9   :  { %175 = vst.msk [vmem:[%s318_s11 + $0x8] sm:$0xff] %vm109_vm3, %v173_v51 }

</bundles_post_ra>
